<compile_context>
chip_gen: v6e
topology: v6e:2x2x1
jax: 0.10.0
libtpu: 0.0.40
codegen_flags: <defaults>
</compile_context>

<pallas_src>
import functools

import jax
import jax.numpy as jnp
from jax.experimental import pallas as pl
from jax.experimental.pallas import tpu as pltpu


_COMPUTE_DTYPE = jnp.bfloat16


def _round_up(x, m):
    return ((x + m - 1) // m) * m


def _vmem_budget():
    """Returns (vmem_limit_bytes to request, tile-planning budget in bytes)."""
    try:
        cap = int(pltpu.get_tpu_info().vmem_capacity_bytes)
    except Exception:
        cap = 64 * 1024 * 1024  # conservative fallback (v7x per-TC size)
    if cap >= 100 * 1024 * 1024:
        # v5e / v6e: 128 MiB physical -> raise well above the scoped default.
        limit = 100 * 1024 * 1024
    else:
        # v7x: 64 MiB physical per TC -> leave headroom for Mosaic scratch.
        limit = max(32 * 1024 * 1024, cap - 12 * 1024 * 1024)
    budget = (limit * 85) // 100  # margin for pipeline/internal buffers
    return limit, budget


def _tile_vmem_bytes(tm, tf, d_model, d_ff, out_itemsize, resident):
    """Rough VMEM footprint: double-buffered pipeline bufs + scratch + temps."""
    bf = 2  # bf16
    x_b = 2 * tm * d_model * bf
    out_b = 2 * tm * d_model * out_itemsize
    if resident:
        w_b = 2 * (d_model * d_ff + d_ff * d_model) * bf
        bias_b = 2 * (d_ff + d_model) * 4
        h_b = tm * d_ff * (4 + bf)       # f32 intermediate + bf16 recast
        acc_b = tm * d_model * 4         # f32 second-matmul result
    else:
        w_b = 2 * (d_model * tf + tf * d_model) * bf
        bias_b = 2 * (tf + d_model) * 4
        h_b = tm * tf * (4 + bf)
        acc_b = 2 * tm * d_model * 4     # accumulator scratch + partial temp
    return x_b + out_b + w_b + bias_b + h_b + acc_b


def _choose_tiles(M, d_model, d_ff, out_itemsize, budget):
    """Pick (tm, tf, resident) for this problem under the VMEM budget."""
    m_align = _round_up(max(M, 16), 16)

    # Token-tile candidates: multiples of 16 (bf16 sublane packing), prefer
    # >= 512 so the weight-streaming path is compute-bound on v6e.  When M is
    # large, cap the tile so there are >= 2 token tiles for v7x megacore.
    cap = m_align
    if m_align >= 512:
        cap = max(256, ((m_align // 2) // 256) * 256)
    tm_cands = [t for t in (1024, 768, 512, 384, 256, 128, 64, 32, 16) if t <= cap]
    if not tm_cands:
        tm_cands = [min(m_align, 16)]

    # d_ff tile candidates (lane-dense multiples of 128).
    tf_cands = [t for t in (2048, 1024, 512, 256, 128) if t <= d_ff]
    if not tf_cands:
        tf_cands = [d_ff]

    # 1) Weight-resident path: full W1/W2 live in VMEM, streamed from HBM once.
    for tm in tm_cands:
        if _tile_vmem_bytes(tm, d_ff, d_model, d_ff, out_itemsize, True) <= budget:
            return tm, d_ff, True

    # 2) Stream d_ff tiles: prioritize tm (arithmetic intensity w.r.t. weight
    #    bytes is ~tm flop/byte), then the largest tf that fits.
    for tm in tm_cands:
        for tf in tf_cands:
            if _tile_vmem_bytes(tm, tf, d_model, d_ff, out_itemsize, False) <= budget:
                return tm, tf, False

    # 3) Last resort (huge d_model): minimal tiles.
    return 16, min(128, d_ff), False


def _ffn_kernel_resident(x_ref, w1_ref, b1_ref, w2_ref, b2_ref, o_ref):
    # Full W1/W2 resident in VMEM: single fused pass, no accumulator needed.
    h = jnp.dot(x_ref[...], w1_ref[...], preferred_element_type=jnp.float32)
    h = jnp.maximum(h + b1_ref[...], 0.0)
    y = jnp.dot(h.astype(w2_ref.dtype), w2_ref[...],
                preferred_element_type=jnp.float32)
    o_ref[...] = (y + b2_ref[...]).astype(o_ref.dtype)


def _ffn_kernel_streamed(x_ref, w1_ref, b1_ref, w2_ref, b2_ref, o_ref, acc_ref):
    # Grid = (token tiles, d_ff tiles); d_ff is the reduction for matmul #2.
    j = pl.program_id(1)
    nj = pl.num_programs(1)

    @pl.when(j == 0)
    def _():
        acc_ref[...] = jnp.zeros_like(acc_ref)

    h = jnp.dot(x_ref[...], w1_ref[...], preferred_element_type=jnp.float32)
    h = jnp.maximum(h + b1_ref[...], 0.0)
    part = jnp.dot(h.astype(w2_ref.dtype), w2_ref[...],
                   preferred_element_type=jnp.float32)

    @pl.when(j < nj - 1)
    def _():
        acc_ref[...] += part

    @pl.when(j == nj - 1)
    def _():
        # Fuse the last partial product into the output write — saves one
        # (tm, d_model) f32 accumulator store + reload per token tile.
        o_ref[...] = (acc_ref[...] + part + b2_ref[...]).astype(o_ref.dtype)


@functools.partial(
    jax.jit,
    static_argnames=("tm", "tf", "resident", "out_dtype", "vmem_limit"))
def _ffn_impl(x, w1, b1, w2, b2, *, tm, tf, resident, out_dtype, vmem_limit):
    batch, seq, d_model = x.shape
    d_ff = w1.shape[1]
    out_dtype = jnp.dtype(out_dtype)
    M = batch * seq

    # Activations are cast per call (cheap relative to the weights). Weights
    # should arrive pre-cast to bf16 (cast once at init); only cast otherwise.
    x2d = x.reshape(M, d_model).astype(_COMPUTE_DTYPE)
    if w1.dtype != _COMPUTE_DTYPE:
        w1 = w1.astype(_COMPUTE_DTYPE)
    if w2.dtype != _COMPUTE_DTYPE:
        w2 = w2.astype(_COMPUTE_DTYPE)
    b1_2d = b1.reshape(1, d_ff).astype(jnp.float32)
    b2_2d = b2.reshape(1, d_model).astype(jnp.float32)

    # Ragged token count: zero-pad rows (sliced off after the kernel).
    M_pad = _round_up(M, tm)
    if M_pad != M:
        x2d = jnp.pad(x2d, ((0, M_pad - M), (0, 0)))
    grid_m = M_pad // tm
    # TODO(synk): for decode-sized M (grid_m == 1) on v7x, split d_model across
    # the two TensorCores with a second parallel output axis.

    io_bytes = (x2d.size * 2 + M_pad * d_model * out_dtype.itemsize
                + (b1_2d.size + b2_2d.size) * 4)

    if resident:
        cost = pl.CostEstimate(
            flops=4 * M_pad * d_model * d_ff,
            transcendentals=0,
            bytes_accessed=io_bytes + (w1.size + w2.size) * 2)
        out2d = pl.pallas_call(
            _ffn_kernel_resident,
            out_shape=jax.ShapeDtypeStruct((M_pad, d_model), out_dtype),
            grid_spec=pltpu.PrefetchScalarGridSpec(
                num_scalar_prefetch=0,
                grid=(grid_m,),
                in_specs=[
                    pl.BlockSpec((tm, d_model), lambda i: (i, 0)),      # x tile
                    pl.BlockSpec((d_model, d_ff), lambda i: (0, 0)),    # W1 (resident)
                    pl.BlockSpec((1, d_ff), lambda i: (0, 0)),          # b1
                    pl.BlockSpec((d_ff, d_model), lambda i: (0, 0)),    # W2 (resident)
                    pl.BlockSpec((1, d_model), lambda i: (0, 0)),       # b2
                ],
                out_specs=pl.BlockSpec((tm, d_model), lambda i: (i, 0)),
            ),
            compiler_params=pltpu.CompilerParams(
                dimension_semantics=("parallel",),
                vmem_limit_bytes=vmem_limit,
            ),
            cost_estimate=cost,
        )(x2d, w1, b1_2d, w2, b2_2d)
    else:
        # Pad d_ff so tf divides it: zero W1 columns / W2 rows / b1 entries
        # contribute exactly zero to the accumulation.
        d_ff_pad = _round_up(d_ff, tf)
        if d_ff_pad != d_ff:
            pad_f = d_ff_pad - d_ff
            w1 = jnp.pad(w1, ((0, 0), (0, pad_f)))
            b1_2d = jnp.pad(b1_2d, ((0, 0), (0, pad_f)))
            w2 = jnp.pad(w2, ((0, pad_f), (0, 0)))
        grid_f = d_ff_pad // tf

        cost = pl.CostEstimate(
            flops=4 * M_pad * d_model * d_ff_pad,
            transcendentals=0,
            # Weights are re-streamed once per token tile.
            bytes_accessed=io_bytes + grid_m * (w1.size + w2.size) * 2)

        out2d = pl.pallas_call(
            _ffn_kernel_streamed,
            out_shape=jax.ShapeDtypeStruct((M_pad, d_model), out_dtype),
            grid_spec=pltpu.PrefetchScalarGridSpec(
                num_scalar_prefetch=0,
                grid=(grid_m, grid_f),
                in_specs=[
                    pl.BlockSpec((tm, d_model), lambda i, j: (i, 0)),   # x tile
                    pl.BlockSpec((d_model, tf), lambda i, j: (0, j)),   # W1 slice
                    pl.BlockSpec((1, tf), lambda i, j: (0, j)),         # b1 slice
                    pl.BlockSpec((tf, d_model), lambda i, j: (j, 0)),   # W2 slice
                    pl.BlockSpec((1, d_model), lambda i, j: (0, 0)),    # b2
                ],
                out_specs=pl.BlockSpec((tm, d_model), lambda i, j: (i, 0)),
                scratch_shapes=[pltpu.VMEM((tm, d_model), jnp.float32)],
            ),
            compiler_params=pltpu.CompilerParams(
                dimension_semantics=("parallel", "arbitrary"),
                vmem_limit_bytes=vmem_limit,
            ),
            cost_estimate=cost,
        )(x2d, w1, b1_2d, w2, b2_2d)

    return out2d[:M].reshape(batch, seq, d_model)


def feed_forward(x, w1, b1, w2, b2, *, out_dtype=None, tm=None, tf=None):
    """y = relu(x @ w1 + b1) @ w2 + b2, matching nn.Linear->ReLU->nn.Linear.

    x: [batch, seq, d_model]; w1: [d_model, d_ff]; w2: [d_ff, d_model].
    Pass weights pre-cast to bfloat16 (cast once at parameter init) to avoid a
    per-call f32->bf16 weight round-trip through HBM.
    """
    batch, seq, d_model = x.shape
    d_ff = w1.shape[1]
    out_dtype = jnp.dtype(x.dtype if out_dtype is None else out_dtype)

    vmem_limit, budget = _vmem_budget()
    auto_tm, auto_tf, resident = _choose_tiles(
        batch * seq, d_model, d_ff, out_dtype.itemsize, budget)

    if tm is None:
        tm = auto_tm
    if tf is None:
        tf = auto_tf if not resident else d_ff
    else:
        resident = False  # an explicit tf selects the streaming path

    return _ffn_impl(x, w1, b1, w2, b2,
                     tm=int(tm), tf=int(tf), resident=bool(resident),
                     out_dtype=out_dtype.name, vmem_limit=int(vmem_limit))


if __name__ == "__main__":
    # Small but lane-dense shapes (d_model/d_ff multiples of 128).
    batch, seq, d_model, d_ff = 2, 16, 128, 256

    key = jax.random.PRNGKey(0)
    kx, kw1, kb1, kw2, kb2 = jax.random.split(key, 5)

    # PyTorch-Linear-like uniform init scales.
    s1 = 1.0 / (d_model ** 0.5)
    s2 = 1.0 / (d_ff ** 0.5)
    x = jax.random.normal(kx, (batch, seq, d_model), dtype=jnp.float32)
    w1 = jax.random.uniform(kw1, (d_model, d_ff), jnp.float32, -s1, s1)
    b1 = jax.random.uniform(kb1, (d_ff,), jnp.float32, -s1, s1)
    w2 = jax.random.uniform(kw2, (d_ff, d_model), jnp.float32, -s2, s2)
    b2 = jax.random.uniform(kb2, (d_model,), jnp.float32, -s2, s2)

    # Pure-JAX f32 reference (kernel uses bf16 matmul inputs -> looser tol).
    ref = jnp.maximum(x @ w1 + b1, 0.0) @ w2 + b2

    # Cast weights to the MXU compute dtype ONCE, at "parameter init" time.
    w1_bf16 = w1.astype(jnp.bfloat16)
    w2_bf16 = w2.astype(jnp.bfloat16)

    out = feed_forward(x, w1_bf16, b1, w2_bf16, b2)
    out = jax.block_until_ready(out)

    assert out.shape == (batch, seq, d_model)
    assert out.dtype == x.dtype
    max_err = float(jnp.max(jnp.abs(out - ref)))
    assert jnp.allclose(out, ref, atol=2e-2, rtol=2e-2), max_err

    print("KERNEL_OK")
</pallas_src>

<mosaic_0001>
module attributes {stable_mosaic.version = 11 : i64} {
  func.func @_ffn_kernel_resident(%arg0: i32, %arg1: memref<32x128xbf16, #tpu.memory_space<vmem>>, %arg2: memref<128x256xbf16, #tpu.memory_space<vmem>>, %arg3: memref<1x256xf32, #tpu.memory_space<vmem>>, %arg4: memref<256x128xbf16, #tpu.memory_space<vmem>>, %arg5: memref<1x128xf32, #tpu.memory_space<vmem>>, %arg6: memref<32x128xf32, #tpu.memory_space<vmem>>) attributes {dimension_semantics = [#tpu.dimension_semantics<parallel>], iteration_bounds = array<i64: 1>, scalar_prefetch = 0 : i64, scratch_operands = 0 : i64, tpu.core_type = #tpu.core_type<tc>, window_params = [{transform_indices = @transform_0, window_bounds = array<i64: 32, 128>}, {pipeline_mode = #tpu.pipeline_mode<synchronous>, transform_indices = @transform_1, window_bounds = array<i64: 128, 256>}, {pipeline_mode = #tpu.pipeline_mode<synchronous>, transform_indices = @transform_2, window_bounds = array<i64: 1, 256>}, {pipeline_mode = #tpu.pipeline_mode<synchronous>, transform_indices = @transform_3, window_bounds = array<i64: 256, 128>}, {pipeline_mode = #tpu.pipeline_mode<synchronous>, transform_indices = @transform_4, window_bounds = array<i64: 1, 128>}, {transform_indices = @transform_5, window_bounds = array<i64: 32, 128>}]} {
    %c0 = arith.constant 0 : index
    %c0_0 = arith.constant 0 : index
    %0 = vector.load %arg1[%c0, %c0_0] : memref<32x128xbf16, #tpu.memory_space<vmem>>, vector<32x128xbf16>
    %c0_1 = arith.constant 0 : index
    %c0_2 = arith.constant 0 : index
    %1 = vector.load %arg2[%c0_1, %c0_2] : memref<128x256xbf16, #tpu.memory_space<vmem>>, vector<128x256xbf16>
    %cst = arith.constant dense<0.000000e+00> : vector<32x256xf32>
    %2 = tpu.matmul %0, %1, %cst {dimension_numbers = #tpu.dot_dimension_numbers<[1], [0], [0], [1], [0, 0, 1, 1], [], []>} : vector<32x128xbf16>, vector<128x256xbf16>, vector<32x256xf32> -> vector<32x256xf32>
    %c0_3 = arith.constant 0 : index
    %c0_4 = arith.constant 0 : index
    %3 = vector.load %arg3[%c0_3, %c0_4] : memref<1x256xf32, #tpu.memory_space<vmem>>, vector<1x256xf32>
    %4 = vector.broadcast %3 : vector<1x256xf32> to vector<32x256xf32>
    %5 = arith.addf %2, %4 : vector<32x256xf32>
    %cst_5 = arith.constant 0.000000e+00 : f32
    %6 = vector.broadcast %cst_5 : f32 to vector<32x256xf32>
    %7 = arith.maximumf %5, %6 : vector<32x256xf32>
    %8 = arith.truncf %7 : vector<32x256xf32> to vector<32x256xbf16>
    %c0_6 = arith.constant 0 : index
    %c0_7 = arith.constant 0 : index
    %9 = vector.load %arg4[%c0_6, %c0_7] : memref<256x128xbf16, #tpu.memory_space<vmem>>, vector<256x128xbf16>
    %cst_8 = arith.constant dense<0.000000e+00> : vector<32x128xf32>
    %10 = tpu.matmul %8, %9, %cst_8 {dimension_numbers = #tpu.dot_dimension_numbers<[1], [0], [0], [1], [0, 0, 1, 1], [], []>} : vector<32x256xbf16>, vector<256x128xbf16>, vector<32x128xf32> -> vector<32x128xf32>
    %c0_9 = arith.constant 0 : index
    %c0_10 = arith.constant 0 : index
    %11 = vector.load %arg5[%c0_9, %c0_10] : memref<1x128xf32, #tpu.memory_space<vmem>>, vector<1x128xf32>
    %12 = vector.broadcast %11 : vector<1x128xf32> to vector<32x128xf32>
    %13 = arith.addf %10, %12 : vector<32x128xf32>
    %c0_11 = arith.constant 0 : index
    %c0_12 = arith.constant 0 : index
    %14 = vector.load %arg6[%c0_11, %c0_12] : memref<32x128xf32, #tpu.memory_space<vmem>>, vector<32x128xf32>
    tpu.vector_store %arg6[%c0_11, %c0_12], %13 {strides = array<i32>} : memref<32x128xf32, #tpu.memory_space<vmem>>, vector<32x128xf32>,
    return
  }
  func.func @transform_0(%arg0: i32) -> (i32, i32) {
    %c0_i32 = arith.constant 0 : i32
    %c0_i32_0 = arith.constant 0 : i32
    return %arg0, %c0_i32 : i32, i32
  }
  func.func @transform_1(%arg0: i32) -> (i32, i32) {
    %c0_i32 = arith.constant 0 : i32
    %c0_i32_0 = arith.constant 0 : i32
    %c0_i32_1 = arith.constant 0 : i32
    return %c0_i32, %c0_i32_0 : i32, i32
  }
  func.func @transform_2(%arg0: i32) -> (i32, i32) {
    %c0_i32 = arith.constant 0 : i32
    %c0_i32_0 = arith.constant 0 : i32
    %c0_i32_1 = arith.constant 0 : i32
    return %c0_i32, %c0_i32_0 : i32, i32
  }
  func.func @transform_3(%arg0: i32) -> (i32, i32) {
    %c0_i32 = arith.constant 0 : i32
    %c0_i32_0 = arith.constant 0 : i32
    %c0_i32_1 = arith.constant 0 : i32
    return %c0_i32, %c0_i32_0 : i32, i32
  }
  func.func @transform_4(%arg0: i32) -> (i32, i32) {
    %c0_i32 = arith.constant 0 : i32
    %c0_i32_0 = arith.constant 0 : i32
    %c0_i32_1 = arith.constant 0 : i32
    return %c0_i32, %c0_i32_0 : i32, i32
  }
  func.func @transform_5(%arg0: i32) -> (i32, i32) {
    %c0_i32 = arith.constant 0 : i32
    %c0_i32_0 = arith.constant 0 : i32
    return %arg0, %c0_i32 : i32, i32
  }
}

</mosaic_0001>

<bundles_post_ra>
// kernel: _ffn_impl.1
= control target key start
LH: loop header
LB: loop body
LE: loop exit
PB: predicated region body
PF: predicated region fallthrough
CT: control target
= control target key end

     0   :  { %10 = vsyncpa [#allocation3], 0  ;;  %s689_s0 = inlined_call_operand.vmem [shape: bf16[32,128], index: 0, kind: input, shape index: {}]   ;;  %s690_s1 = inlined_call_operand.hbm [shape: bf16[128,256], index: 1, kind: input, shape index: {}]   ;;  %s691_s2 = inlined_call_operand.vmem [shape: f32[1,256], index: 2, kind: input, shape index: {}]   ;;  %s692_s3 = inlined_call_operand.hbm [shape: bf16[256,128], index: 3, kind: input, shape index: {}]   ;;  %s693_s4 = inlined_call_operand.vmem [shape: f32[1,128], index: 4, kind: input, shape index: {}]   ;;  %s694_s5 = inlined_call_operand.hbm [shape: f32[32,128], index: 5, kind: output, shape index: {}]  }
   0x1   :  { %11 = vsyncpa [#allocation6], 0 }
   0x2   :  { %12 = vsyncpa [#allocation4], 0  ;;  %s624_s18 = smov [#allocation2]  }
   0x3   :  { %s20_s19 = sshll.u32 %s624_s18, 4  ;;  %s21_s19 = int_to_ptr.vmem [resolvable:$true] %s20_s19 }
   0x4   :  { %s566_s20 = scalar_lea.vmem %s21_s19, 2048  ;;  %p571_p1 = scmp.lt.s32.totalorder %s21_s19, %s21_s19 }
   0x5   :  { %p567_p0 = scmp.ne.s32.totalorder %s21_s19, %s566_s20  ;;  %p572_p2 = scmp.lt.s32.totalorder %s566_s20, %s566_s20 }
   0x7   :  { %p573_p3 = por %p572_p2, %p571_p1 }
   0x9   :  { %p574_p4 = pnand %p573_p3, %p567_p0 }
   0xb   :  { %577 = shalt.err (!%p574_p4)
}
   0xc   :  { %s625_s21 = smov 128   ;;  %s626_s22 = smov 8  }
   0xd   :  { %26 = dma.hbm_to_vmem [thread:$0]  %s690_s1, 2048, %s21_s19, [#allocation3], %s625_s21, %s625_s21, %s626_s22  }
   0xe   :  { %s627_s25 = smov [#allocation5]  }
   0xf   :  { %s34_s26 = sshll.u32 %s627_s25, 4  ;;  %s35_s26 = int_to_ptr.vmem [resolvable:$true] %s34_s26 }
  0x10   :  { %s586_s27 = scalar_lea.vmem %s35_s26, 2048  ;;  %p591_p6 = scmp.lt.s32.totalorder %s35_s26, %s35_s26 }
  0x11   :  { %p587_p5 = scmp.ne.s32.totalorder %s35_s26, %s586_s27  ;;  %p592_p7 = scmp.lt.s32.totalorder %s586_s27, %s586_s27 }
  0x13   :  { %p593_p8 = por %p592_p7, %p591_p6 }
  0x15   :  { %p594_p9 = pnand %p593_p8, %p587_p5 }
  0x17   :  { %597 = shalt.err (!%p594_p9)
}
  0x18   :  { %s628_s28 = smov 64   ;;  %s629_s29 = smov 4  }
  0x19   :  { %40 = dma.hbm_to_vmem [thread:$0]  %s692_s3, 2048, %s35_s26, [#allocation6], %s628_s28, %s628_s28, %s629_s29  }
  0x1a   :  { %618 = dma.done.wait [#allocation3], 2048  }
  0x1b   :  { %619 = vsyncadd [#allocation3], 4294965248 }
  0x1c   :  { %620 = dma.done.wait [#allocation6], 2048  }
  0x1d   :  { %621 = vsyncadd [#allocation6], 4294965248  ;;  %v630_v0 = vmov 0   ;;  %v516_v1 = vld [vmem:[#allocation2 + $0x74] ss:$8 sps:$4 sm:$0xff]   ;;  %v546_v16 = vld [vmem:[#allocation5 + $0x68] sm:$0xff]   ;;  %v72_v35 = vlaneseq }
  0x1e   :  { %206 = vmatprep.mubr.bf16.mxu0 %v630_v0  ;;  %v518_v2 = vld [vmem:[#allocation2 + $0x70] ss:$8 sps:$4 sm:$0xff]   ;;  %174 = vmatprep.subr.bf16.mxu0 %v516_v1  ;;  %v519_v3 = vld [vmem:[#allocation2 + $0x64] ss:$8 sps:$4 sm:$0xff]   ;;  %v521_v4 = vld [vmem:[#allocation2 + $0x60] ss:$8 sps:$4 sm:$0xff]  }
  0x1f   :  { %175 = vmatpush1.bf16.msra.mxu0 %v518_v2  ;;  %v522_v5 = vld [vmem:[#allocation2 + $0x54] ss:$8 sps:$4 sm:$0xff]   ;;  %v524_v6 = vld [vmem:[#allocation2 + $0x50] ss:$8 sps:$4 sm:$0xff]   ;;  %v525_v7 = vld [vmem:[#allocation2 + $0x44] ss:$8 sps:$4 sm:$0xff]  }
  0x20   :  { %176 = vmatprep.subr.bf16.mxu0 %v519_v3  ;;  %v527_v8 = vld [vmem:[#allocation2 + $0x40] ss:$8 sps:$4 sm:$0xff]   ;;  %v528_v9 = vld [vmem:[#allocation2 + $0x34] ss:$8 sps:$4 sm:$0xff]   ;;  %v530_v10 = vld [vmem:[#allocation2 + $0x30] ss:$8 sps:$4 sm:$0xff]  }
  0x21   :  { %v542_v11 = vld [vmem:[#allocation5 + $0x78] sm:$0xff]   ;;  %v531_v12 = vld [vmem:[#allocation2 + $0x24] ss:$8 sps:$4 sm:$0xff]   ;;  %v544_v14 = vld [vmem:[#allocation5 + $0x70] sm:$0xff]   ;;  %v73_v36 = vshrl.u32 %v72_v35, 7  ;;  %s631_s11 = smov [#allocation7]  }
  0x22   :  { %v543_v13 = vld [vmem:[#allocation5 + $0x38] sm:$0xff]   ;;  %480 = vmatprep.subr.bf16.mxu1 %v542_v11  ;;  %v545_v15 = vld [vmem:[#allocation5 + $0x30] sm:$0xff]   ;;  %v533_v17 = vld [vmem:[#allocation2 + $0x20] ss:$8 sps:$4 sm:$0xff]   ;;  %s432_s12 = sshll.u32 %s631_s11, 4  ;;  %s433_s12 = int_to_ptr.vmem [resolvable:$true] %s432_s12 }
  0x23   :  { %177 = vmatpush1.bf16.msra.mxu0 %v521_v4  ;;  %481 = vmatpush3.bf16.msra.mxu1 %v543_v13  ;;  %v534_v18 = vld [vmem:[#allocation2 + $0x14] ss:$8 sps:$4 sm:$0xff]   ;;  %v547_v19 = vld [vmem:[#allocation5 + $0x28] sm:$0xff]   ;;  %v536_v20 = vld [vmem:[#allocation2 + $0x10] ss:$8 sps:$4 sm:$0xff]   ;;  %v78_v37 = vsub.s32 1, %v73_v36  ;;  %p603_p11 = scmp.lt.s32.totalorder %s433_s12, %s433_s12 }
  0x24   :  { %178 = vmatprep.subr.bf16.mxu0 %v522_v5  ;;  %482 = vmatprep.subr.bf16.mxu1 %v544_v14  ;;  %v548_v21 = vld [vmem:[#allocation5 + $0x60] sm:$0xff]   ;;  %v550_v24 = vld [vmem:[#allocation5 + $0x58] sm:$0xff]   ;;  %v541_v28 = vld [vmem:[%s689_s0 + $0x8] sm:$0xff]   ;;  %v74_v38 = vsub.s32 0, %v73_v36 }
  0x25   :  { %v537_v22 = vld [vmem:[#allocation2 + $0x4] ss:$8 sps:$4 sm:$0xff]   ;;  %v539_v25 = vld [vmem:[#allocation2] ss:$8 sps:$4 sm:$0xff]   ;;  %v551_v26 = vld [vmem:[#allocation5 + $0x18] sm:$0xff]  }
  0x26   :  { %v549_v23 = vld [vmem:[#allocation5 + $0x20] sm:$0xff]   ;;  %v552_v29 = vld [vmem:[#allocation5 + $0x50] sm:$0xff]   ;;  %v554_v31 = vld [vmem:[#allocation5 + $0x48] sm:$0xff]  }
  0x27   :  { %179 = vmatpush1.bf16.msra.mxu0 %v524_v6  ;;  %483 = vmatpush3.bf16.msra.mxu1 %v545_v15  ;;  %v540_v27 = vld [vmem:[%s689_s0] sm:$0xff]   ;;  %v553_v30 = vld [vmem:[#allocation5 + $0x10] sm:$0xff]   ;;  %v555_v32 = vld [vmem:[#allocation5 + $0x8] sm:$0xff]  }
  0x28   :  { %180 = vmatprep.subr.bf16.mxu0 %v525_v7  ;;  %484 = vmatprep.subr.bf16.mxu1 %v546_v16  ;;  %v556_v33 = vld [vmem:[#allocation5 + $0x40] sm:$0xff]  }
  0x29   :  { %v557_v34 = vld [vmem:[#allocation5] sm:$0xff]  }
  0x2a   :  { %v70_v39 = vld [vmem:[%s691_s2] sm:$0x3] }
  0x2b   :  { %181 = vmatpush1.bf16.msra.mxu0 %v527_v8  ;;  %485 = vmatpush3.bf16.msra.mxu1 %v547_v19  ;;  %v79_v41 = vrot.slane %v70_v39, %v78_v37  ;;  %v75_v42 = vrot.slane %v70_v39, %v74_v38  ;;  %v463_v7 = vld [vmem:[%s693_s4] ss:$0 sm:$0xff]  ;;  %s598_s4 = scalar_lea.vmem %s433_s12, 512 }
  0x2c   :  { %182 = vmatprep.subr.bf16.mxu0 %v528_v9  ;;  %486 = vmatprep.subr.bf16.mxu1 %v548_v21  ;;  %p599_p10 = scmp.ne.s32.totalorder %s433_s12, %s598_s4  ;;  %p604_p12 = scmp.lt.s32.totalorder %s598_s4, %s598_s4 }
  0x2e   :  { %p605_p13 = por %p604_p12, %p603_p11 }
  0x2f   :  { %183 = vmatpush1.bf16.msra.mxu0 %v530_v10  ;;  %487 = vmatpush3.bf16.msra.mxu1 %v549_v23 }
  0x30   :  { %184 = vmatprep.subr.bf16.mxu0 %v531_v12  ;;  %488 = vmatprep.subr.bf16.mxu1 %v550_v24  ;;  %p606_p0 = pnand %p605_p13, %p599_p10 }
  0x33   :  { %185 = vmatpush1.bf16.msra.mxu0 %v533_v17  ;;  %489 = vmatpush3.bf16.msra.mxu1 %v551_v26 }
  0x34   :  { %186 = vmatprep.subr.bf16.mxu0 %v534_v18  ;;  %490 = vmatprep.subr.bf16.mxu1 %v552_v29 }
  0x37   :  { %187 = vmatpush1.bf16.msra.mxu0 %v536_v20  ;;  %491 = vmatpush3.bf16.msra.mxu1 %v553_v30 }
  0x38   :  { %188 = vmatprep.subr.bf16.mxu0 %v537_v22  ;;  %492 = vmatprep.subr.bf16.mxu1 %v554_v31 }
  0x3b   :  { %189 = vmatpush1.bf16.msra.mxu0 %v539_v25  ;;  %493 = vmatpush3.bf16.msra.mxu1 %v555_v32 }
  0x3c   :  { %494 = vmatprep.subr.bf16.mxu1 %v556_v33 }
  0x3e   :  { %207 = vmatmul.mubr.bf16.vlgmr.msra.gmra.mxu0 %v540_v27 }
  0x3f   :  { %216 = vmatprep.mubr.bf16.mxu0 %v630_v0  ;;  %495 = vmatpush3.bf16.msra.mxu1 %v557_v34 }
  0x46   :  { %217 = vmatmul.mubr.bf16.gmra.mxu0 %v541_v28 }
  0xfe   :  { %v208_v40 = vpop.f32.mrf.mxu0 }
  0xff   :  { %v209_v47 = vadd.f32 %v208_v40, %v75_v42 }
 0x100   :  { %v210_v43 = vpop.f32.mrf.mxu0 }
 0x101   :  { %v211_v45 = vadd.f32 %v210_v43, %v79_v41  ;;  %v227_v54 = vmax.f32 %v209_v47, 0.0 }
 0x102   :  { %v212_v44 = vpop.f32.mrf.mxu0 }
 0x103   :  { %v213_v46 = vadd.f32 %v212_v44, %v75_v42  ;;  %v228_v52 = vmax.f32 %v211_v45, 0.0 }
 0x104   :  { %v214_v48 = vpop.f32.mrf.mxu0 }
 0x105   :  { %v215_v49 = vadd.f32 %v214_v48, %v79_v41  ;;  %v229_v50 = vmax.f32 %v213_v46, 0.0 }
 0x106   :  { %v218_v51 = vpop.f32.mrf.mxu0 }
 0x107   :  { %v230_v53 = vmax.f32 %v215_v49, 0.0  ;;  %v235_v57 = vpack.c.bf16 %v229_v50, %v227_v54  ;;  %v219_v61 = vadd.f32 %v218_v51, %v75_v42 }
 0x108   :  { %v220_v55 = vpop.f32.mrf.mxu0 }
 0x109   :  { %v236_v56 = vpack.c.bf16 %v230_v53, %v228_v52  ;;  %v221_v59 = vadd.f32 %v220_v55, %v79_v41  ;;  %v231_v3 = vmax.f32 %v219_v61, 0.0 }
 0x10a   :  { %v222_v58 = vpop.f32.mrf.mxu0 }
 0x10b   :  { %v223_v60 = vadd.f32 %v222_v58, %v75_v42  ;;  %406 = vmatprep.mubr.bf16.mxu1 %v236_v56  ;;  %v232_v1 = vmax.f32 %v221_v59, 0.0 }
 0x10c   :  { %v224_v62 = vpop.f32.mrf.mxu0  ;;  %407 = vmatmul.mubr.bf16.vlgmr.msra.gmra.mxu1 %v235_v57 }
 0x10d   :  { %v225_v63 = vadd.f32 %v224_v62, %v79_v41  ;;  %v233_v0 = vmax.f32 %v223_v60, 0.0 }
 0x10f   :  { %v234_v2 = vmax.f32 %v225_v63, 0.0  ;;  %v237_v5 = vpack.c.bf16 %v233_v0, %v231_v3 }
 0x111   :  { %v238_v4 = vpack.c.bf16 %v234_v2, %v232_v1 }
 0x113   :  { %414 = vmatprep.mubr.bf16.mxu1 %v238_v4 }
 0x114   :  { %415 = vmatmul.mubr.bf16.gmra.mxu1 %v237_v5 }
 0x1cc   :  { %v496_v6 = vpop.f32.mrf.mxu1 }
 0x1ce   :  { %v497_v8 = vpop.f32.mrf.mxu1 }
 0x1cf   :  { %v498_v9 = vadd.f32 %v497_v8, %v496_v6 }
 0x1d0   :  { %v499_v10 = vpop.f32.mrf.mxu1 }
 0x1d1   :  { %v409_v11 = vadd.f32 %v498_v9, %v463_v7 }
 0x1d2   :  { %v500_v12 = vpop.f32.mrf.mxu1 }
 0x1d3   :  { %423 = vst [vmem:[#allocation7] sm:$0xff] %v409_v11  ;;  %v501_v13 = vadd.f32 %v500_v12, %v499_v10 }
 0x1d4   :  { %v502_v14 = vpop.f32.mrf.mxu1 }
 0x1d5   :  { %v412_v15 = vadd.f32 %v501_v13, %v463_v7 }
 0x1d6   :  { %v503_v16 = vpop.f32.mrf.mxu1 }
 0x1d7   :  { %424 = vst [vmem:[#allocation7 + $0x8] sm:$0xff] %v412_v15  ;;  %v504_v17 = vadd.f32 %v503_v16, %v502_v14 }
 0x1d8   :  { %v505_v18 = vpop.f32.mrf.mxu1 }
 0x1d9   :  { %v417_v19 = vadd.f32 %v504_v17, %v463_v7 }
 0x1da   :  { %v506_v20 = vpop.f32.mrf.mxu1 }
 0x1db   :  { %425 = vst [vmem:[#allocation7 + $0x10] sm:$0xff] %v417_v19  ;;  %v507_v21 = vadd.f32 %v506_v20, %v505_v18 }
 0x1dd   :  { %v420_v22 = vadd.f32 %v507_v21, %v463_v7 }
 0x1df   :  { %426 = vst [vmem:[#allocation7 + $0x18] sm:$0xff] %v420_v22 }
 0x1e0   :  { %609 = shalt.err (!%p606_p0)
}
 0x1e1   :  { %438 = dma.vmem_to_hbm [thread:$0]  %s433_s12, 512, %s694_s5, [#allocation4], %s625_s21, %s625_s21, %s626_s22  }
 0x1e2   :  { %622 = dma.done.wait [#allocation4], 512  }
 0x1e3   :  { %623 = vsyncadd [#allocation4], 4294966784 }
 0x1e4   :  { %442 = vsyncpa [#allocation3], 1 }
 0x1e5   :  { %443 = vsyncpa [#allocation6], 1 }
 0x1e6   :  { %444 = vsyncpa [#allocation4], 1 }

</bundles_post_ra>
